<compile_context>
chip_gen: v5e
topology: v5e:2x2
jax: 0.10.0
libtpu: 0.0.40
codegen_flags: <defaults>
</compile_context>

<pallas_src>
import jax
import jax.numpy as jnp
from jax.experimental import pallas as pl
from jax.experimental.pallas import tpu as pltpu

EPS = 1e-5
N, C1 = 1, 20          # BatchNorm1d input: (N, C) = (1, 20)
C2, H, W = 5, 2, 2     # reshape target (1, 5, 2, 2)


def _fused_affine_kernel(x_ref, p_ref, o_ref):
    # p_ref: (2, C1) packed params; row 0 = scale A, row 1 = offset B.
    o_ref[...] = x_ref[...] * p_ref[0:1, :] + p_ref[1:2, :]


def fold_batch_norm_params(params):
    """One-time (init-time) folding of both eval-mode batch norms into a single
    affine. Returns a packed (2, C1) float32 array [A; B]."""
    (g1, b1, m1, v1, g2, b2, m2, v2) = (p.astype(jnp.float32) for p in params)

    # Broadcast BN2d 5-channel params to per-element (20,) vectors according to
    # the (1,20)->(1,5,2,2) reshape: flat_index // (H*W) -> bn2d channel.
    bcast2 = lambda a: jnp.repeat(a, H * W)
    g2b, b2b, m2b, v2b = bcast2(g2), bcast2(b2), bcast2(m2), bcast2(v2)

    r1 = jax.lax.rsqrt(v1 + EPS)
    r2 = jax.lax.rsqrt(v2b + EPS)

    scale = g1 * r1 * g2b * r2              # A
    offset = (b1 - m1 * g1 * r1 - m2b) * g2b * r2 + b2b   # B

    return jnp.stack([scale, offset], axis=0)  # (2, C1) float32


def fused_batch_norm(x, packed_params):
    """x: (1, 20) float32, packed_params: (2, 20) float32 -> (1, 5, 2, 2)."""
    vmem_spec = pl.BlockSpec(memory_space=pltpu.MemorySpace.VMEM)
    out = pl.pallas_call(
        _fused_affine_kernel,
        out_shape=jax.ShapeDtypeStruct((N, C1), jnp.float32),
        in_specs=[vmem_spec, vmem_spec],
        out_specs=vmem_spec,
        cost_estimate=pl.CostEstimate(
            flops=2 * N * C1, transcendentals=0,
            bytes_accessed=4 * (N * C1 + 2 * C1 + N * C1)),
    )(x.astype(jnp.float32), packed_params)

    return out.reshape(1, C2, H, W)


def _reference(x, params):
    (g1, b1, m1, v1, g2, b2, m2, v2) = (p.astype(jnp.float32) for p in params)
    y = (x - m1[None, :]) / jnp.sqrt(v1[None, :] + EPS) * g1[None, :] + b1[None, :]
    y = y.reshape(1, C2, H, W)
    y = ((y - m2[None, :, None, None]) / jnp.sqrt(v2[None, :, None, None] + EPS)
         * g2[None, :, None, None] + b2[None, :, None, None])
    return y


if __name__ == "__main__":
    key = jax.random.PRNGKey(0)
    x = jax.random.normal(key, (N, C1), dtype=jnp.float32)

    # Deterministic synthetic parameters (weight / bias / running stats).
    g1 = 1.0 + 0.01 * jnp.arange(C1, dtype=jnp.float32)
    b1 = 0.10 * jnp.arange(C1, dtype=jnp.float32)
    m1 = 0.05 * jnp.arange(C1, dtype=jnp.float32) - 0.5
    v1 = 1.0 + 0.02 * jnp.arange(C1, dtype=jnp.float32)

    g2 = 1.0 + 0.10 * jnp.arange(C2, dtype=jnp.float32)
    b2 = -0.20 * jnp.arange(C2, dtype=jnp.float32)
    m2 = 0.30 * jnp.arange(C2, dtype=jnp.float32) - 0.6
    v2 = 0.5 + 0.25 * jnp.arange(C2, dtype=jnp.float32)

    params = (g1, b1, m1, v1, g2, b2, m2, v2)

    # Hoisted out of the per-call path: fold both BNs into one affine once.
    packed = jax.block_until_ready(fold_batch_norm_params(params))

    out = fused_batch_norm(x, packed)
    out = jax.block_until_ready(out)

    ref = _reference(x, params)
    assert out.shape == (1, C2, H, W)
    assert jnp.allclose(out, ref, atol=1e-5, rtol=1e-5)

    print("KERNEL_OK")
</pallas_src>

<mosaic_0001>
module attributes {stable_mosaic.version = 11 : i64} {
  func.func @_fused_affine_kernel(%arg0: memref<1x20xf32, #tpu.memory_space<vmem>>, %arg1: memref<2x20xf32, #tpu.memory_space<vmem>>, %arg2: memref<1x20xf32, #tpu.memory_space<vmem>>) attributes {dimension_semantics = [], scalar_prefetch = 0 : i64, scratch_operands = 0 : i64, tpu.core_type = #tpu.core_type<tc>} {
    %c0 = arith.constant 0 : index
    %c0_0 = arith.constant 0 : index
    %0 = vector.load %arg0[%c0, %c0_0] : memref<1x20xf32, #tpu.memory_space<vmem>>, vector<1x20xf32>
    %c0_1 = arith.constant 0 : index
    %c0_2 = arith.constant 0 : index
    %1 = vector.load %arg1[%c0_1, %c0_2] : memref<2x20xf32, #tpu.memory_space<vmem>>, vector<1x20xf32>
    %2 = arith.mulf %0, %1 : vector<1x20xf32>
    %c1 = arith.constant 1 : index
    %c0_3 = arith.constant 0 : index
    %3 = vector.load %arg1[%c1, %c0_3] : memref<2x20xf32, #tpu.memory_space<vmem>>, vector<1x20xf32>
    %4 = arith.addf %2, %3 : vector<1x20xf32>
    %c0_4 = arith.constant 0 : index
    %c0_5 = arith.constant 0 : index
    %5 = vector.load %arg2[%c0_4, %c0_5] : memref<1x20xf32, #tpu.memory_space<vmem>>, vector<1x20xf32>
    tpu.vector_store %arg2[%c0_4, %c0_5], %4 {strides = array<i32>} : memref<1x20xf32, #tpu.memory_space<vmem>>, vector<1x20xf32>,
    return
  }
}

</mosaic_0001>

<bundles_post_ra>
// kernel: tpu_custom_call.1
= control target key start
LH: loop header
LB: loop body
LE: loop exit
PB: predicated region body
PF: predicated region fallthrough
CT: control target
= control target key end

     0   :  { %7 = vsyncpa [#allocation3], 0  ;;  %s173_s0 = inlined_call_operand.hbm [shape: f32[1,20], index: 0, kind: input, shape index: {}]   ;;  %s174_s1 = inlined_call_operand.hbm [shape: f32[2,20], index: 1, kind: input, shape index: {}]   ;;  %s175_s2 = inlined_call_operand.hbm [shape: f32[1,20], index: 2, kind: output, shape index: {}]  }
   0x1   :  { %8 = vsyncpa [#allocation6], 0 }
   0x2   :  { %9 = vsyncpa [#allocation4], 0  ;;  %s15_s11 = sshll.u32 %s173_s0, 4  ;;  %s146_s12 = smov [#allocation2]   ;;  %s16_s11 = int_to_ptr.hbm [resolvable:$true] %s15_s11 }
   0x3   :  { %s17_s13 = sshll.u32 %s146_s12, 4  ;;  %s26_s16 = sshll.u32 %s174_s1, 4  ;;  %s18_s13 = int_to_ptr.vmem [resolvable:$true] %s17_s13  ;;  %s27_s16 = int_to_ptr.hbm [resolvable:$true] %s26_s16 }
   0x4   :  { %20 = dma.hbm_to_vmem [thread:$0]  %s16_s11, 16, %s18_s13, [#allocation3]  }
   0x5   :  { %s147_s17 = smov [#allocation5]  }
   0x6   :  { %s28_s18 = sshll.u32 %s147_s17, 4  ;;  %s29_s18 = int_to_ptr.vmem [resolvable:$true] %s28_s18 }
   0x7   :  { %31 = dma.hbm_to_vmem [thread:$0]  %s27_s16, 32, %s29_s18, [#allocation6]  }
   0x8   :  { %140 = dma.done.wait [#allocation3], 16  }
   0x9   :  { %141 = vsyncadd [#allocation3], 4294967280 }
   0xa   :  { %142 = dma.done.wait [#allocation6], 32  }
   0xb   :  { %143 = vsyncadd [#allocation6], 4294967264  ;;  %s148_s19 = smov [#allocation7]   ;;  %s54_s22 = sshll.u32 %s175_s2, 4  ;;  %v40_v0 = vld [vmem:[#allocation2] sm:$0x1]  ;;  %s55_s22 = int_to_ptr.hbm [resolvable:$true] %s54_s22 }
   0xc   :  { %s52_s0 = sshll.u32 %s148_s19, 4  ;;  %v41_v1 = vld [vmem:[#allocation5] sm:$0x1]  ;;  %v43_v2 = vld [vmem:[#allocation5 + $0x1] sm:$0x1]  ;;  %vm45_vm0 = vcmask 155648   ;;  %s53_s0 = int_to_ptr.vmem [resolvable:$true] %s52_s0 }
   0xd   :  { %v42_v3 = vmul.f32 %v41_v1, %v40_v0 }
   0xf   :  { %v44_v4 = vadd.f32 %v43_v2, %v42_v3 }
  0x11   :  { %46 = vst.msk [vmem:[#allocation7] sm:$0x1] %vm45_vm0, %v44_v4 }
  0x12   :  { %57 = dma.vmem_to_hbm [thread:$0]  %s53_s0, 16, %s55_s22, [#allocation4]  }
  0x13   :  { %144 = dma.done.wait [#allocation4], 16  }
  0x14   :  { %145 = vsyncadd [#allocation4], 4294967280 }
  0x15   :  { %62 = vsyncpa [#allocation3], 1 }
  0x16   :  { %63 = vsyncpa [#allocation6], 1 }
  0x17   :  { %64 = vsyncpa [#allocation4], 1 }

</bundles_post_ra>
